<compile_context>
chip_gen: v7x
topology: tpu7x:2x2x1
jax: 0.10.0
libtpu: 0.0.40
codegen_flags: <defaults>
</compile_context>

<pallas_src>
import jax
import jax.numpy as jnp
from jax.experimental import pallas as pl
from jax.experimental.pallas import tpu as pltpu

SUBLANE = 8            # row tiles are multiples of this (f32 sublane height)
MIN_TM = 256           # below 2*MIN_TM rows, splitting for the 2nd TC isn't worth it
MAX_TM = 2048          # row-tile cap; x tile = 2048*32*4B ~ 256 KiB (x2 dbl-buffer)
PALLAS_MIN_ROWS = 1024  # below this, fused XLA matmul beats pallas_call fixed cost


def _round_up(x, m):
    return (x + m - 1) // m * m


def _choose_tm(M):
    """Pick (tm, Mp): tm multiple of SUBLANE, <= MAX_TM, minimizing padded rows,
    and keeping grid length >= 2 when M is large enough so the parallel M axis
    can shard across v7x's two TensorCores."""
    m8 = _round_up(max(M, 1), SUBLANE)
    if m8 < 2 * MIN_TM:
        return m8, m8                               # single tile, minimal padding
    if m8 <= 2 * MAX_TM:
        tm = _round_up((m8 + 1) // 2, SUBLANE)      # two near-equal tiles -> grid=(2,)
        return tm, _round_up(m8, tm)
    best_tm = MAX_TM
    best_pad = _round_up(m8, MAX_TM) - m8
    for t in range(MAX_TM, MIN_TM - 1, -SUBLANE):   # trace-time Python search only
        pad = _round_up(m8, t) - m8
        if pad < best_pad:
            best_tm, best_pad = t, pad
            if pad == 0:
                break
    return best_tm, _round_up(m8, best_tm)


def _linear_kernel(x_ref, w_ref, b_ref, o_ref):
    # x_ref: (tm, K) caller dtype ; w_ref: (K, N) bf16 ; b_ref: (1, N) f32
    # Cast x to bf16 in-register (no extra HBM pass), MXU matmul with f32
    # accumulation, bias added in the f32 epilogue.
    x = x_ref[...].astype(jnp.bfloat16)
    acc = jnp.dot(x, w_ref[...], preferred_element_type=jnp.float32)
    o_ref[...] = (acc + b_ref[...]).astype(o_ref.dtype)


def pallas_linear(x2d, w_t_bf16, b_row, out_dtype, tm):
    """x2d: (Mp, K) with Mp % tm == 0 (K unpadded; block last dim == full dim).
    w_t_bf16: (K, N) bf16 (pre-transposed).  b_row: (1, N) f32.
    Returns (Mp, N) out_dtype."""
    Mp, K = x2d.shape
    _, N = w_t_bf16.shape
    grid = (Mp // tm,)
    bytes_accessed = (Mp * K * x2d.dtype.itemsize
                      + K * N * w_t_bf16.dtype.itemsize
                      + N * b_row.dtype.itemsize
                      + Mp * N * jnp.dtype(out_dtype).itemsize)
    return pl.pallas_call(
        _linear_kernel,
        out_shape=jax.ShapeDtypeStruct((Mp, N), out_dtype),
        grid_spec=pltpu.PrefetchScalarGridSpec(
            num_scalar_prefetch=0,
            grid=grid,
            in_specs=[
                pl.BlockSpec((tm, K), lambda i: (i, 0)),   # x row-tile, K unpadded
                pl.BlockSpec((K, N), lambda i: (0, 0)),    # weight, grid-invariant
                pl.BlockSpec((1, N), lambda i: (0, 0)),    # bias, grid-invariant
            ],
            out_specs=pl.BlockSpec((tm, N), lambda i: (i, 0)),
        ),
        compiler_params=pltpu.CompilerParams(
            # Row tiles are independent -> shard across v7x's 2 TensorCores.
            dimension_semantics=("parallel",),
        ),
        cost_estimate=pl.CostEstimate(
            flops=2 * Mp * K * N,
            transcendentals=0,
            bytes_accessed=bytes_accessed,
        ),
    )(x2d, w_t_bf16, b_row)


class MPSCompatibleModuleJAX:
    """JAX analogue of MPSCompatibleModule: a transparent wrapper.

    The MPS/CPU fallback path only moves tensors between devices and disables
    gradients — neither changes numerical results, and neither has meaning on
    a single-TPU JAX program, so forward() simply dispatches to the wrapped
    module.  # TODO(synk): torch.no_grad() / .cpu() / .to(device) hops are
    framework device plumbing with no Pallas equivalent (no compute).
    """

    def __init__(self, module_fn, fallback_to_cpu=False):
        self.module_fn = module_fn
        self.fallback_to_cpu = fallback_to_cpu
        self.device = None

    def forward(self, *args, **kwargs):
        # Device-fallback branch is compute-identical; always call the module.
        return self.module_fn(*args, **kwargs)

    def __call__(self, *args, **kwargs):
        return self.forward(*args, **kwargs)

    def to(self, device):
        self.device = device
        return self


def make_inner_linear(in_features, out_features, key):
    """Deterministic nn.Linear(in_features, out_features) equivalent."""
    kw, kb = jax.random.split(key)
    bound = 1.0 / float(in_features) ** 0.5
    # PyTorch stores weight as (out, in); keep that convention for the params.
    w = jax.random.uniform(kw, (out_features, in_features), jnp.float32, -bound, bound)
    b = jax.random.uniform(kb, (out_features,), jnp.float32, -bound, bound)

    # Hoisted out of the per-call path (done once): transposed bf16 weight for
    # the MXU and the bias as a (1, N) f32 row for the in-kernel f32 epilogue.
    # TODO(synk): if in/out_features grows past a few hundred, tile N (and K
    # with a P3 accumulator) in multiples of 256 for the v6e/v7x MXU shape and
    # to keep the resident double-buffered weight inside v7x's smaller VMEM.
    w_t_bf16 = w.T.astype(jnp.bfloat16)   # (K, N)
    b_row = b.reshape(1, -1)              # (1, N) f32

    def linear_fn(x, force_pallas=False):
        # x: (batch, seq, in_features) -> (batch, seq, out_features)
        batch, seq, hid = x.shape
        M = batch * seq

        if M < PALLAS_MIN_ROWS and not force_pallas:
            # Overhead-bound regime: fused XLA matmul beats pallas_call's
            # fixed cost at tiny M.
            y = x.reshape(M, hid) @ w.T + b
            return y.reshape(batch, seq, out_features).astype(x.dtype)

        tm, Mp = _choose_tm(M)
        x2d = x.reshape(M, hid)            # no K pad, no dtype cast here
        if Mp != M:
            x2d = jnp.pad(x2d, ((0, Mp - M), (0, 0)))
        out = pallas_linear(x2d, w_t_bf16, b_row, x.dtype, tm)
        if Mp != M:
            out = out[:M]
        return out.reshape(batch, seq, out_features)

    return linear_fn, (w, b)


if __name__ == "__main__":
    key = jax.random.PRNGKey(0)
    k_param, k_x = jax.random.split(key)

    batch, seq, hidden = 2, 8, 32
    inner_fn, (w, b) = make_inner_linear(hidden, hidden, k_param)
    wrapped = MPSCompatibleModuleJAX(inner_fn, fallback_to_cpu=True).to("tpu")

    x = jax.random.normal(k_x, (batch, seq, hidden), jnp.float32)

    # Force the Pallas path so the kernel is exercised (the size dispatch
    # would route this tiny M=16 shape to the fused XLA matmul).
    out = wrapped(x, force_pallas=True)
    out = jax.block_until_ready(out)

    # Reference: plain f32 Linear of the wrapped module.
    ref = x @ w.T + b
    assert out.shape == (batch, seq, hidden)
    assert out.dtype == x.dtype
    # Tolerance loosened: the kernel feeds bf16 operands to the MXU (f32 acc),
    # so rounding differs from a pure-f32 matmul.
    assert jnp.allclose(out, ref, atol=2e-2, rtol=2e-2), \
        f"max abs err = {jnp.max(jnp.abs(out - ref))}"

    # Auto-dispatch path (small-M fused XLA matmul) must match exactly.
    out_auto = jax.block_until_ready(wrapped(x))
    assert jnp.allclose(out_auto, ref, atol=1e-5, rtol=1e-5)

    print("KERNEL_OK")
</pallas_src>

<mosaic_0001>
module attributes {stable_mosaic.version = 11 : i64} {
  func.func @_linear_kernel(%arg0: i32, %arg1: memref<16x32xf32, #tpu.memory_space<vmem>>, %arg2: memref<32x32xbf16, #tpu.memory_space<vmem>>, %arg3: memref<1x32xf32, #tpu.memory_space<vmem>>, %arg4: memref<16x32xf32, #tpu.memory_space<vmem>>) attributes {dimension_semantics = [#tpu.dimension_semantics<parallel>], iteration_bounds = array<i64: 1>, scalar_prefetch = 0 : i64, scratch_operands = 0 : i64, tpu.core_type = #tpu.core_type<tc>, window_params = [{transform_indices = @transform_0, window_bounds = array<i64: 16, 32>}, {pipeline_mode = #tpu.pipeline_mode<synchronous>, transform_indices = @transform_1, window_bounds = array<i64: 32, 32>}, {pipeline_mode = #tpu.pipeline_mode<synchronous>, transform_indices = @transform_2, window_bounds = array<i64: 1, 32>}, {transform_indices = @transform_3, window_bounds = array<i64: 16, 32>}]} {
    %c0 = arith.constant 0 : index
    %c0_0 = arith.constant 0 : index
    %0 = vector.load %arg1[%c0, %c0_0] : memref<16x32xf32, #tpu.memory_space<vmem>>, vector<16x32xf32>
    %1 = arith.truncf %0 : vector<16x32xf32> to vector<16x32xbf16>
    %c0_1 = arith.constant 0 : index
    %c0_2 = arith.constant 0 : index
    %2 = vector.load %arg2[%c0_1, %c0_2] : memref<32x32xbf16, #tpu.memory_space<vmem>>, vector<32x32xbf16>
    %cst = arith.constant dense<0.000000e+00> : vector<16x32xf32>
    %3 = tpu.matmul %1, %2, %cst {dimension_numbers = #tpu.dot_dimension_numbers<[1], [0], [0], [1], [0, 0, 1, 1], [], []>} : vector<16x32xbf16>, vector<32x32xbf16>, vector<16x32xf32> -> vector<16x32xf32>
    %c0_3 = arith.constant 0 : index
    %c0_4 = arith.constant 0 : index
    %4 = vector.load %arg3[%c0_3, %c0_4] : memref<1x32xf32, #tpu.memory_space<vmem>>, vector<1x32xf32>
    %5 = vector.broadcast %4 : vector<1x32xf32> to vector<16x32xf32>
    %6 = arith.addf %3, %5 : vector<16x32xf32>
    %c0_5 = arith.constant 0 : index
    %c0_6 = arith.constant 0 : index
    %7 = vector.load %arg4[%c0_5, %c0_6] : memref<16x32xf32, #tpu.memory_space<vmem>>, vector<16x32xf32>
    tpu.vector_store %arg4[%c0_5, %c0_6], %6 {strides = array<i32>} : memref<16x32xf32, #tpu.memory_space<vmem>>, vector<16x32xf32>,
    return
  }
  func.func @transform_0(%arg0: i32) -> (i32, i32) {
    %c0_i32 = arith.constant 0 : i32
    %c0_i32_0 = arith.constant 0 : i32
    return %arg0, %c0_i32 : i32, i32
  }
  func.func @transform_1(%arg0: i32) -> (i32, i32) {
    %c0_i32 = arith.constant 0 : i32
    %c0_i32_0 = arith.constant 0 : i32
    %c0_i32_1 = arith.constant 0 : i32
    return %c0_i32, %c0_i32_0 : i32, i32
  }
  func.func @transform_2(%arg0: i32) -> (i32, i32) {
    %c0_i32 = arith.constant 0 : i32
    %c0_i32_0 = arith.constant 0 : i32
    %c0_i32_1 = arith.constant 0 : i32
    return %c0_i32, %c0_i32_0 : i32, i32
  }
  func.func @transform_3(%arg0: i32) -> (i32, i32) {
    %c0_i32 = arith.constant 0 : i32
    %c0_i32_0 = arith.constant 0 : i32
    return %arg0, %c0_i32 : i32, i32
  }
}

</mosaic_0001>

<bundles_post_ra>
// kernel: tpu_custom_call.1
= control target key start
LH: loop header
LB: loop body
LE: loop exit
PB: predicated region body
PF: predicated region fallthrough
CT: control target
= control target key end

     0   :  { %8 = vsyncpa [#allocation3], 0  ;;  %s307_s0 = inlined_call_operand.hbm [shape: f32[16,32], index: 0, kind: input, shape index: {}]   ;;  %s308_s1 = inlined_call_operand.hbm [shape: bf16[32,32], index: 1, kind: input, shape index: {}]   ;;  %s309_s2 = inlined_call_operand.vmem [shape: f32[1,32], index: 2, kind: input, shape index: {}]   ;;  %s310_s3 = inlined_call_operand.hbm [shape: f32[16,32], index: 3, kind: output, shape index: {}]  }
   0x1   :  { %9 = vsyncpa [#allocation6], 0 }
   0x2   :  { %10 = vsyncpa [#allocation4], 0  ;;  %s233_s12 = smov [#allocation2]   ;;  %s161_s16 = scalar_lea.hbm %s307_s0, 256 }
   0x3   :  { %s16_s13 = sshll.u32 %s233_s12, 4  ;;  %p162_p0 = scmp.ne.s32.totalorder %s307_s0, %s161_s16  ;;  %s17_s13 = int_to_ptr.vmem [resolvable:$true] %s16_s13 }
   0x4   :  { %p165_p1 = scmp.lt.u32.totalorder %s161_s16, %s307_s0 }
   0x6   :  { %p167_p2 = pnand %p165_p1, %p162_p0 }
   0x8   :  { %170 = shalt.err (!%p167_p2)
}
   0x9   :  { %s171_s21 = scalar_lea.vmem %s17_s13, 256  ;;  %p176_p4 = scmp.lt.s32.totalorder %s17_s13, %s17_s13 }
   0xa   :  { %p172_p3 = scmp.ne.s32.totalorder %s17_s13, %s171_s21  ;;  %p177_p5 = scmp.lt.s32.totalorder %s171_s21, %s171_s21 }
   0xc   :  { %p178_p6 = por %p177_p5, %p176_p4 }
   0xe   :  { %p179_p7 = pnand %p178_p6, %p172_p3 }
  0x10   :  { %182 = shalt.err (!%p179_p7)
}
  0x11   :  { %s234_s22 = smov 128   ;;  %s235_s23 = smov 8  }
  0x12   :  { %22 = dma.hbm_to_vmem [thread:$0]  %s307_s0, 256, %s17_s13, [#allocation3], %s234_s22, %s234_s22, %s235_s23  }
  0x13   :  { %s236_s26 = smov [#allocation5]   ;;  %s183_s30 = scalar_lea.hbm %s308_s1, 256 }
  0x14   :  { %s28_s27 = sshll.u32 %s236_s26, 4  ;;  %p184_p8 = scmp.ne.s32.totalorder %s308_s1, %s183_s30  ;;  %s29_s27 = int_to_ptr.vmem [resolvable:$true] %s28_s27 }
  0x15   :  { %p187_p9 = scmp.lt.u32.totalorder %s183_s30, %s308_s1 }
  0x17   :  { %p189_p10 = pnand %p187_p9, %p184_p8 }
  0x19   :  { %192 = shalt.err (!%p189_p10)
}
  0x1a   :  { %s193_s8 = scalar_lea.vmem %s29_s27, 256  ;;  %p198_p12 = scmp.lt.s32.totalorder %s29_s27, %s29_s27 }
  0x1b   :  { %p194_p11 = scmp.ne.s32.totalorder %s29_s27, %s193_s8  ;;  %p199_p13 = scmp.lt.s32.totalorder %s193_s8, %s193_s8 }
  0x1d   :  { %p200_p0 = por %p199_p13, %p198_p12 }
  0x1f   :  { %p201_p1 = pnand %p200_p0, %p194_p11 }
  0x21   :  { %204 = shalt.err (!%p201_p1)
}
  0x22   :  { %s237_s0 = smov 64   ;;  %s238_s9 = smov 4  }
  0x23   :  { %34 = dma.hbm_to_vmem [thread:$0]  %s308_s1, 256, %s29_s27, [#allocation6], %s237_s0, %s237_s0, %s238_s9  }
  0x24   :  { %227 = dma.done.wait [#allocation3], 256  }
  0x25   :  { %228 = vsyncadd [#allocation3], 4294967040 }
  0x26   :  { %229 = dma.done.wait [#allocation6], 256  }
  0x27   :  { %230 = vsyncadd [#allocation6], 4294967040  ;;  %v239_v0 = vmov 0.0   ;;  %vm240_vm0 = vmmov 0   ;;  %v159_v1 = vld [vmem:[#allocation5] sm:$0xff]   ;;  %v160_v2 = vld [vmem:[#allocation5 + $0x8] sm:$0xff]  }
  0x28   :  { %142 = vmatprep.subr.bf16.mxu0 %v239_v0  ;;  %146 = vmatprep.mubr.msk.bf16.mxu0 %vm240_vm0, %v239_v0  ;;  %v44_v3 = vld [vmem:[#allocation2] sm:$0xff]  ;;  %v45_v4 = vld [vmem:[#allocation2 + $0x8] sm:$0xff]  ;;  %vm70_vm1 = vcmask 261120   ;;  %s241_s13 = smov [#allocation7]  }
  0x29   :  { %143 = vmatpush3.bf16.msra.mxu0 %v159_v1  ;;  %v46_v5 = vpack.c.bf16 %v45_v4, %v44_v3  ;;  %v135_v6 = vld [vmem:[%s309_s2] ss:$0 sm:$0xff]  ;;  %s122_s14 = sshll.u32 %s241_s13, 4  ;;  %s123_s14 = int_to_ptr.vmem [resolvable:$true] %s122_s14 }
  0x2a   :  { %144 = vmatprep.subr.bf16.mxu0 %v239_v0  ;;  %s205_s15 = scalar_lea.vmem %s123_s14, 256  ;;  %p210_p3 = scmp.lt.s32.totalorder %s123_s14, %s123_s14 }
  0x2b   :  { %p206_p2 = scmp.ne.s32.totalorder %s123_s14, %s205_s15  ;;  %p211_p4 = scmp.lt.s32.totalorder %s205_s15, %s205_s15 }
  0x2d   :  { %145 = vmatpush3.bf16.msra.mxu0 %v160_v2  ;;  %p212_p5 = por %p211_p4, %p210_p3 }
  0x2f   :  { %p213_p6 = pnand %p212_p5, %p206_p2 }
  0x30   :  { %147 = vmatmul.mubr.msk.bf16.vlgmr.msra.gmra.mrb[0].mxu0 %vm70_vm1, %v46_v5 }
 0x103   :  { %v108_v7 = vpop.f32.mrb[0].mxu0 }
 0x104   :  { %v109_v8 = vadd.f32 %v135_v6, %v108_v7  ;;  %v148_v9 = vpop.f32.mrb[1].mxu0 }
 0x105   :  { %v111_v10 = vpop.f32.mrb[2].mxu0 }
 0x106   :  { %115 = vst.msk [vmem:[#allocation7] sm:$0xff] %vm70_vm1, %v109_v8  ;;  %v112_v11 = vadd.f32 %v135_v6, %v111_v10  ;;  %v149_v12 = vpop.f32.mrb[3].mxu0 }
 0x108   :  { %116 = vst.msk [vmem:[#allocation7 + $0x8] sm:$0xff] %vm70_vm1, %v112_v11 }
 0x109   :  { %216 = shalt.err (!%p213_p6)
}
 0x10a   :  { %s217_s17 = scalar_lea.hbm %s310_s3, 256 }
 0x10b   :  { %p218_p7 = scmp.ne.s32.totalorder %s310_s3, %s217_s17  ;;  %p221_p8 = scmp.lt.u32.totalorder %s217_s17, %s310_s3 }
 0x10d   :  { %p223_p9 = pnand %p221_p8, %p218_p7 }
 0x10f   :  { %226 = shalt.err (!%p223_p9)
}
 0x110   :  { %128 = dma.vmem_to_hbm [thread:$0]  %s123_s14, 256, %s310_s3, [#allocation4], %s234_s22, %s234_s22, %s235_s23  }
 0x111   :  { %231 = dma.done.wait [#allocation4], 256  }
 0x112   :  { %232 = vsyncadd [#allocation4], 4294967040 }
 0x113   :  { %132 = vsyncpa [#allocation3], 1 }
 0x114   :  { %133 = vsyncpa [#allocation6], 1 }
 0x115   :  { %134 = vsyncpa [#allocation4], 1 }

</bundles_post_ra>
